<compile_context>
chip_gen: v7x
topology: tpu7x:2x2x1
jax: 0.10.0
libtpu: 0.0.40
codegen_flags: <defaults>
</compile_context>

<pallas_src>
import functools
import math

import jax
import jax.numpy as jnp
from jax.experimental import pallas as pl
from jax.experimental.pallas import tpu as pltpu


_LANE = 128
_VMEM_BUFFER_BUDGET = 26 * 1024 * 1024   # target for double-buffered tiles + acc
_VMEM_LIMIT_BYTES = 48 * 1024 * 1024     # safe on v5e/v6e (128 MiB) and v7x (64 MiB)
_TM_CAP = 512
_TN_CAP = 512


def _cdiv(a: int, b: int) -> int:
    return -(-a // b)


def _round_up(x: int, m: int) -> int:
    return _cdiv(x, m) * m


def _sublane_align(dtype) -> int:
    # f32 -> 8, bf16 -> 16, int8/fp8 -> 32 (sublane packing)
    return max(8, 32 // jnp.dtype(dtype).itemsize)


def _pick_tile(dim: int, align: int, cap: int) -> int:
    """Padding-aware tile size: <= cap, multiple of align, balanced blocks."""
    dim = max(int(dim), 1)
    if dim <= cap:
        return min(_round_up(dim, align), cap)
    return _round_up(_cdiv(dim, _cdiv(dim, cap)), align)


# ----------------------------- kernels --------------------------------------


def _linear_kernel_fused(x_ref, wt_ref, b_ref, o_ref, *, apply_sigmoid: bool):
    # Single K slab: one MXU pass per output tile, bias + sigmoid fused (f32).
    z = jnp.dot(x_ref[...], wt_ref[...], preferred_element_type=jnp.float32)
    z = z + b_ref[...]                     # broadcast [1, TN] f32
    if apply_sigmoid:
        z = jax.nn.sigmoid(z)              # EUP
    o_ref[...] = z.astype(o_ref.dtype)


def _linear_kernel_ktiled(x_ref, wt_ref, b_ref, o_ref, acc_ref, *,
                          apply_sigmoid: bool):
    # grid = (j over Cout tiles, i over batch tiles, k over Cin tiles).
    k = pl.program_id(2)

    @pl.when(k == 0)
    def _():
        acc_ref[...] = jnp.zeros_like(acc_ref)

    acc_ref[...] += jnp.dot(x_ref[...], wt_ref[...],
                            preferred_element_type=jnp.float32)

    @pl.when(k == pl.num_programs(2) - 1)
    def _():
        z = acc_ref[...] + b_ref[...]
        if apply_sigmoid:
            z = jax.nn.sigmoid(z)
        o_ref[...] = z.astype(o_ref.dtype)


# ----------------------------- host-side API ---------------------------------


def prepare_params(weight, bias, param_dtype=None):
    """One-time packing of Linear parameters (off the per-call hot path).

    weight: [Cout, Cin], bias: [Cout].
    Transposes W and zero-pads K (required for a correct padded contraction)
    and N (lane-dense, free) to multiples of 128. Bias is kept in f32.
    """
    Cout, Cin = weight.shape
    if param_dtype is not None:
        weight = weight.astype(param_dtype)
    Kp = _round_up(Cin, _LANE)
    Np = _round_up(Cout, _LANE)
    wt = jnp.pad(weight.T, ((0, Kp - Cin), (0, Np - Cout)))            # [Kp, Np]
    b2d = jnp.pad(bias.astype(jnp.float32).reshape(1, Cout),
                  ((0, 0), (0, Np - Cout)))                            # [1, Np]
    return {"wt": wt, "b2d": b2d, "in_channels": Cin, "out_channels": Cout}


def linear_forward(x, params, sigmoid: bool = False, *, max_tk=None):
    """x: [..., Cin] -> [..., Cout]; params from prepare_params()."""
    wt, b2d = params["wt"], params["b2d"]
    Cin, Cout = params["in_channels"], params["out_channels"]
    Kp, Np = wt.shape

    lead = x.shape[:-1]
    assert x.shape[-1] == Cin, "last dim of x must equal in_channels"
    M = int(math.prod(lead)) if lead else 1
    x2 = x.reshape(M, Cin)
    if x2.dtype != wt.dtype:
        # Prefer preparing params in the activation dtype to avoid this cast.
        x2 = x2.astype(wt.dtype)
    if Kp != Cin:
        # Zero-pad K only (required: the contraction must add exact zeros).
        x2 = jnp.pad(x2, ((0, 0), (0, Kp - Cin)))

    out_dtype = x.dtype
    itm = x2.dtype.itemsize
    itw = wt.dtype.itemsize
    ito = jnp.dtype(out_dtype).itemsize
    align_m = _sublane_align(x2.dtype)

    TM = _pick_tile(M, align_m, _TM_CAP)
    TN = _pick_tile(Np, _LANE, _TN_CAP)
    num_m = _cdiv(M, TM)
    num_n = _cdiv(Cout, TN)

    # v7x megacore: guarantee >= 2 parallel grid blocks when the problem allows.
    if num_m * num_n == 1 and M >= 2 * align_m:
        TM = _round_up(_cdiv(M, 2), align_m)
        num_m = _cdiv(M, TM)

    # Contraction slab: take the whole K when it fits the VMEM buffer budget,
    # otherwise fall back to K-tiling with a TK that exactly divides Kp.
    fixed = 2 * TM * TN * ito + 2 * TN * 4 + TM * TN * 4    # out dbuf + bias dbuf + acc
    per_k = 2 * TM * itm + 2 * TN * itw                     # x dbuf + W dbuf per K column
    tk_budget = max(_LANE,
                    ((_VMEM_BUFFER_BUDGET - fixed) // per_k) // _LANE * _LANE)
    if max_tk is not None:
        tk_budget = max(_LANE, min(tk_budget, int(max_tk)))

    if Kp <= tk_budget:
        TK, num_k = Kp, 1
    else:
        q = Kp // _LANE
        d = max(dd for dd in range(1, q + 1)
                if q % dd == 0 and dd * _LANE <= tk_budget)
        TK = d * _LANE
        num_k = Kp // TK

    cost = pl.CostEstimate(
        flops=2 * M * Cin * Cout,
        transcendentals=(M * Cout if sigmoid else 0),
        bytes_accessed=(num_n * M * Kp * itm                         # x re-read per j
                        + (num_m if num_k > 1 else 1) * Kp * Np * itw  # W traffic
                        + M * Cout * ito + Np * 4),
    )

    if num_k == 1:
        kernel = functools.partial(_linear_kernel_fused, apply_sigmoid=sigmoid)
        grid = (num_n, num_m)
        in_specs = [
            pl.BlockSpec((TM, TK), lambda j, i: (i, 0)),
            # W^T column slab: index depends only on j -> truly resident while
            # x streams over the batch; W read from HBM exactly once.
            pl.BlockSpec((TK, TN), lambda j, i: (0, j)),
            pl.BlockSpec((1, TN), lambda j, i: (0, j)),
        ]
        out_specs = pl.BlockSpec((TM, TN), lambda j, i: (i, j))
        scratch = []
        dims = ("parallel", "parallel")
    else:
        kernel = functools.partial(_linear_kernel_ktiled, apply_sigmoid=sigmoid)
        grid = (num_n, num_m, num_k)
        in_specs = [
            pl.BlockSpec((TM, TK), lambda j, i, k: (i, k)),
            pl.BlockSpec((TK, TN), lambda j, i, k: (k, j)),
            pl.BlockSpec((1, TN), lambda j, i, k: (0, j)),
        ]
        out_specs = pl.BlockSpec((TM, TN), lambda j, i, k: (i, j))
        scratch = [pltpu.VMEM((TM, TN), jnp.float32)]
        dims = ("parallel", "parallel", "arbitrary")

    out = pl.pallas_call(
        kernel,
        out_shape=jax.ShapeDtypeStruct((M, Cout), out_dtype),
        grid_spec=pltpu.PrefetchScalarGridSpec(
            num_scalar_prefetch=0,
            grid=grid,
            in_specs=in_specs,
            out_specs=out_specs,
            scratch_shapes=scratch,
        ),
        compiler_params=pltpu.CompilerParams(
            dimension_semantics=dims,
            vmem_limit_bytes=_VMEM_LIMIT_BYTES,
        ),
        cost_estimate=cost,
    )(x2, wt, b2d)

    return out.reshape(*lead, Cout) if lead else out.reshape(Cout)


class PallasMultilabelClassifier:
    """Pallas TPU port of MultilabelClassifier (Linear + optional sigmoid).
    Parameters are packed once at construction (transpose/pad off the hot path)."""

    def __init__(self, weight, bias, param_dtype=None):
        self.params = prepare_params(weight, bias, param_dtype)

    def __call__(self, x, sigmoid: bool = False):
        return linear_forward(x, self.params, sigmoid=sigmoid)


def multilabel_classifier_forward(x, weight, bias, sigmoid: bool = False):
    """One-shot convenience wrapper (packs params every call; prefer the class)."""
    return linear_forward(x, prepare_params(weight, bias), sigmoid=sigmoid)


# ----------------------------- self-test --------------------------------------


def _reference(x, weight, bias, sigmoid=False):
    z = x.astype(jnp.float32) @ weight.astype(jnp.float32).T + bias.astype(jnp.float32)
    return jax.nn.sigmoid(z) if sigmoid else z


if __name__ == "__main__":
    key = jax.random.PRNGKey(0)

    # --- Test 1: small shapes typical of the module --------------------------
    B, in_ch, out_ch = 8, 32, 16
    kx, kw, kb = jax.random.split(key, 3)
    bound = 1.0 / jnp.sqrt(jnp.float32(in_ch))
    x = jax.random.normal(kx, (B, in_ch), dtype=jnp.float32)
    w = jax.random.uniform(kw, (out_ch, in_ch), minval=-bound, maxval=bound,
                           dtype=jnp.float32)
    b = jax.random.uniform(kb, (out_ch,), minval=-bound, maxval=bound,
                           dtype=jnp.float32)

    clf = PallasMultilabelClassifier(w, b)
    out = jax.block_until_ready(clf(x, sigmoid=False))
    assert jnp.allclose(out, _reference(x, w, b, False), atol=1e-4, rtol=1e-4)
    out_s = jax.block_until_ready(clf(x, sigmoid=True))
    assert jnp.allclose(out_s, _reference(x, w, b, True), atol=1e-4, rtol=1e-4)

    # 3-D input (Linear semantics over leading dims)
    x3 = jax.random.normal(jax.random.PRNGKey(3), (2, 5, in_ch), dtype=jnp.float32)
    out3 = jax.block_until_ready(clf(x3, sigmoid=True))
    ref3 = _reference(x3.reshape(-1, in_ch), w, b, True).reshape(2, 5, out_ch)
    assert jnp.allclose(out3, ref3, atol=1e-4, rtol=1e-4)

    # --- Test 2: larger K, non-128 Cout, megacore batch split ---------------
    B2, in2, out2 = 96, 640, 40
    k2x, k2w, k2b = jax.random.split(jax.random.PRNGKey(1), 3)
    bound2 = 1.0 / jnp.sqrt(jnp.float32(in2))
    x2 = jax.random.normal(k2x, (B2, in2), dtype=jnp.float32)
    w2 = jax.random.uniform(k2w, (out2, in2), minval=-bound2, maxval=bound2,
                            dtype=jnp.float32)
    b2 = jax.random.uniform(k2b, (out2,), minval=-bound2, maxval=bound2,
                            dtype=jnp.float32)
    clf2 = PallasMultilabelClassifier(w2, b2)
    out2_s = jax.block_until_ready(clf2(x2, sigmoid=True))
    assert jnp.allclose(out2_s, _reference(x2, w2, b2, True), atol=1e-4, rtol=1e-4)

    # Force the K-tiled fallback path (accumulator + pl.when init/finalize)
    out2_kt = jax.block_until_ready(
        linear_forward(x2, clf2.params, sigmoid=True, max_tk=256))
    assert jnp.allclose(out2_kt, _reference(x2, w2, b2, True), atol=1e-4, rtol=1e-4)

    # --- Test 3: bf16 operands (native-rate MXU), f32 accumulation ----------
    B3, in3, out3c = 64, 256, 24
    k3x, k3w, k3b = jax.random.split(jax.random.PRNGKey(2), 3)
    bound3 = 1.0 / jnp.sqrt(jnp.float32(in3))
    x_bf = jax.random.normal(k3x, (B3, in3), dtype=jnp.float32).astype(jnp.bfloat16)
    w_bf = jax.random.uniform(k3w, (out3c, in3), minval=-bound3, maxval=bound3,
                              dtype=jnp.float32).astype(jnp.bfloat16)
    b_bf = jax.random.uniform(k3b, (out3c,), minval=-bound3, maxval=bound3,
                              dtype=jnp.float32).astype(jnp.bfloat16)
    clf3 = PallasMultilabelClassifier(w_bf, b_bf)
    out_bf = jax.block_until_ready(clf3(x_bf, sigmoid=True))
    ref_bf = _reference(x_bf, w_bf, b_bf, True)
    assert jnp.allclose(out_bf.astype(jnp.float32), ref_bf, atol=2e-2, rtol=2e-2)

    print("KERNEL_OK")
</pallas_src>

<mosaic_0001>
module attributes {stable_mosaic.version = 11 : i64} {
  func.func @_linear_kernel_fused(%arg0: i32, %arg1: i32, %arg2: memref<8x128xf32, #tpu.memory_space<vmem>>, %arg3: memref<128x128xf32, #tpu.memory_space<vmem>>, %arg4: memref<1x128xf32, #tpu.memory_space<vmem>>, %arg5: memref<8x128xf32, #tpu.memory_space<vmem>>) attributes {dimension_semantics = [#tpu.dimension_semantics<parallel>, #tpu.dimension_semantics<parallel>], iteration_bounds = array<i64: 1, 1>, scalar_prefetch = 0 : i64, scratch_operands = 0 : i64, tpu.core_type = #tpu.core_type<tc>, window_params = [{transform_indices = @transform_0, window_bounds = array<i64: 8, 128>}, {transform_indices = @transform_1, window_bounds = array<i64: 128, 128>}, {transform_indices = @transform_2, window_bounds = array<i64: 1, 128>}, {transform_indices = @transform_3, window_bounds = array<i64: 8, 128>}]} {
    %c0 = arith.constant 0 : index
    %c0_0 = arith.constant 0 : index
    %0 = vector.load %arg2[%c0, %c0_0] : memref<8x128xf32, #tpu.memory_space<vmem>>, vector<8x128xf32>
    %c0_1 = arith.constant 0 : index
    %c0_2 = arith.constant 0 : index
    %1 = vector.load %arg3[%c0_1, %c0_2] : memref<128x128xf32, #tpu.memory_space<vmem>>, vector<128x128xf32>
    %cst = arith.constant dense<0.000000e+00> : vector<8x128xf32>
    %2 = tpu.matmul %0, %1, %cst {dimension_numbers = #tpu.dot_dimension_numbers<[1], [0], [0], [1], [0, 0, 1, 1], [], []>} : vector<8x128xf32>, vector<128x128xf32>, vector<8x128xf32> -> vector<8x128xf32>
    %c0_3 = arith.constant 0 : index
    %c0_4 = arith.constant 0 : index
    %3 = vector.load %arg4[%c0_3, %c0_4] : memref<1x128xf32, #tpu.memory_space<vmem>>, vector<1x128xf32>
    %4 = vector.broadcast %3 : vector<1x128xf32> to vector<8x128xf32>
    %5 = arith.addf %2, %4 : vector<8x128xf32>
    %c0_5 = arith.constant 0 : index
    %c0_6 = arith.constant 0 : index
    %6 = vector.load %arg5[%c0_5, %c0_6] : memref<8x128xf32, #tpu.memory_space<vmem>>, vector<8x128xf32>
    tpu.vector_store %arg5[%c0_5, %c0_6], %5 {strides = array<i32>} : memref<8x128xf32, #tpu.memory_space<vmem>>, vector<8x128xf32>,
    return
  }
  func.func @transform_0(%arg0: i32, %arg1: i32) -> (i32, i32) {
    %c0_i32 = arith.constant 0 : i32
    %c0_i32_0 = arith.constant 0 : i32
    return %arg1, %c0_i32 : i32, i32
  }
  func.func @transform_1(%arg0: i32, %arg1: i32) -> (i32, i32) {
    %c0_i32 = arith.constant 0 : i32
    %c0_i32_0 = arith.constant 0 : i32
    return %c0_i32, %arg0 : i32, i32
  }
  func.func @transform_2(%arg0: i32, %arg1: i32) -> (i32, i32) {
    %c0_i32 = arith.constant 0 : i32
    %c0_i32_0 = arith.constant 0 : i32
    return %c0_i32, %arg0 : i32, i32
  }
  func.func @transform_3(%arg0: i32, %arg1: i32) -> (i32, i32) {
    %c0_i32 = arith.constant 0 : i32
    return %arg1, %arg0 : i32, i32
  }
}

</mosaic_0001>

<bundles_post_ra>
// kernel: tpu_custom_call.1
= control target key start
LH: loop header
LB: loop body
LE: loop exit
PB: predicated region body
PF: predicated region fallthrough
CT: control target
= control target key end

     0   :  { %8 = vsyncpa [#allocation3], 0  ;;  %s383_s0 = inlined_call_operand.hbm [shape: f32[8,128], index: 0, kind: input, shape index: {}]   ;;  %s384_s1 = inlined_call_operand.hbm [shape: f32[128,128], index: 1, kind: input, shape index: {}]   ;;  %s385_s2 = inlined_call_operand.vmem [shape: f32[1,128], index: 2, kind: input, shape index: {}]   ;;  %s386_s3 = inlined_call_operand.hbm [shape: f32[8,16], index: 3, kind: output, shape index: {}]  }
   0x1   :  { %9 = vsyncpa [#allocation6], 0 }
   0x2   :  { %10 = vsyncpa [#allocation4], 0  ;;  %s309_s12 = smov [#allocation2]   ;;  %s310_s14 = smov [#allocation5]  }
   0x3   :  { %s17_s13 = sshll.u32 %s309_s12, 4  ;;  %s26_s15 = sshll.u32 %s310_s14, 4  ;;  %s18_s13 = int_to_ptr.vmem [resolvable:$true] %s17_s13  ;;  %s337_s15 = int_to_ptr.vmem [resolvable:$true] %s26_s15 }
   0x4   :  { %s237_s18 = scalar_lea.hbm %s383_s0, 128 }
   0x5   :  { %p238_p0 = scmp.ne.s32.totalorder %s383_s0, %s237_s18  ;;  %p241_p1 = scmp.lt.u32.totalorder %s237_s18, %s383_s0 }
   0x7   :  { %p243_p2 = pnand %p241_p1, %p238_p0 }
   0x9   :  { %246 = shalt.err (!%p243_p2)
}
   0xa   :  { %s247_s23 = scalar_lea.vmem %s18_s13, 128  ;;  %p252_p4 = scmp.lt.s32.totalorder %s18_s13, %s18_s13 }
   0xb   :  { %p248_p3 = scmp.ne.s32.totalorder %s18_s13, %s247_s23  ;;  %p253_p5 = scmp.lt.s32.totalorder %s247_s23, %s247_s23 }
   0xd   :  { %p254_p6 = por %p253_p5, %p252_p4 }
   0xf   :  { %p255_p7 = pnand %p254_p6, %p248_p3 }
  0x11   :  { %258 = shalt.err (!%p255_p7)
}
  0x12   :  { %20 = dma.hbm_to_vmem [thread:$0]  %s383_s0, 128, %s18_s13, [#allocation3]  }
  0x13   :  { %s259_s28 = scalar_lea.hbm %s384_s1, 2048 }
  0x14   :  { %p260_p8 = scmp.ne.s32.totalorder %s384_s1, %s259_s28  ;;  %p263_p9 = scmp.lt.u32.totalorder %s259_s28, %s384_s1 }
  0x16   :  { %p265_p10 = pnand %p263_p9, %p260_p8 }
  0x18   :  { %268 = shalt.err (!%p265_p10)
}
  0x19   :  { %s269_s6 = scalar_lea.vmem %s337_s15, 2048  ;;  %p274_p12 = scmp.lt.s32.totalorder %s337_s15, %s337_s15 }
  0x1a   :  { %p270_p11 = scmp.ne.s32.totalorder %s337_s15, %s269_s6  ;;  %p275_p13 = scmp.lt.s32.totalorder %s269_s6, %s269_s6 }
  0x1c   :  { %p276_p0 = por %p275_p13, %p274_p12 }
  0x1e   :  { %p277_p1 = pnand %p276_p0, %p270_p11 }
  0x20   :  { %280 = shalt.err (!%p277_p1)
}
  0x21   :  { %s311_s0 = smov 128   ;;  %s312_s7 = smov 8  }
  0x22   :  { %32 = dma.hbm_to_vmem [thread:$0]  %s384_s1, 2048, %s337_s15, [#allocation6], %s311_s0, %s311_s0, %s312_s7  }
  0x23   :  { %303 = dma.done.wait [#allocation3], 128  }
  0x24   :  { %304 = vsyncadd [#allocation3], 4294967168 }
  0x25   :  { %305 = dma.done.wait [#allocation6], 2048  }
  0x26   :  { %306 = vsyncadd [#allocation6], 4294965248  ;;  %v313_v0 = vmov 0.0|0.0   ;;  %vm314_vm0 = vmmov 0   ;;  %v315_v1 = vmov 0.0   ;;  %v42_v2 = vld [vmem:[#allocation5] sm:$0xff] }
  0x27   :  { %205 = vmatprep.subr.bf16.mxu0 %v313_v0  ;;  %202 = vmatprep.mubr.msk.f32.mxu0 %vm314_vm0, %v315_v1  ;;  %v43_v3 = vld [vmem:[#allocation5 + $0x8] sm:$0xff]  ;;  %v44_v4 = vld [vmem:[#allocation5 + $0x10] sm:$0xff]  ;;  %v45_v6 = vld [vmem:[#allocation5 + $0x18] sm:$0xff]  ;;  %s316_s11 = smov [#allocation7]  }
  0x28   :  { %v206_v5 = vpack.c.bf16 %v43_v3, %v42_v2  ;;  %v209_v7 = vpack.c.bf16 %v45_v6, %v44_v4  ;;  %v46_v8 = vld [vmem:[#allocation5 + $0x20] sm:$0xff]  ;;  %v47_v9 = vld [vmem:[#allocation5 + $0x28] sm:$0xff]  ;;  %v48_v11 = vld [vmem:[#allocation5 + $0x30] sm:$0xff]  ;;  %s142_s12 = sshll.u32 %s316_s11, 4  ;;  %s143_s12 = int_to_ptr.vmem [resolvable:$true] %s142_s12 }
  0x29   :  { %v212_v10 = vpack.c.bf16 %v47_v9, %v46_v8  ;;  %v49_v12 = vld [vmem:[#allocation5 + $0x38] sm:$0xff]  ;;  %v50_v14 = vld [vmem:[#allocation5 + $0x40] sm:$0xff]  ;;  %v51_v15 = vld [vmem:[#allocation5 + $0x48] sm:$0xff]  ;;  %s281_s13 = scalar_lea.vmem %s143_s12, 128  ;;  %p286_p3 = scmp.lt.s32.totalorder %s143_s12, %s143_s12 }
  0x2a   :  { %207 = vmatpush3.bf16.msra.mxu0 %v206_v5  ;;  %v215_v13 = vpack.c.bf16 %v49_v12, %v48_v11  ;;  %v218_v16 = vpack.c.bf16 %v51_v15, %v50_v14  ;;  %v52_v17 = vld [vmem:[#allocation5 + $0x50] sm:$0xff]  ;;  %v53_v18 = vld [vmem:[#allocation5 + $0x58] sm:$0xff]  ;;  %v54_v20 = vld [vmem:[#allocation5 + $0x60] sm:$0xff]  ;;  %p282_p2 = scmp.ne.s32.totalorder %s143_s12, %s281_s13  ;;  %p287_p4 = scmp.lt.s32.totalorder %s281_s13, %s281_s13 }
  0x2b   :  { %208 = vmatprep.subr.bf16.mxu0 %v313_v0  ;;  %v221_v19 = vpack.c.bf16 %v53_v18, %v52_v17  ;;  %v55_v21 = vld [vmem:[#allocation5 + $0x68] sm:$0xff]  ;;  %v56_v23 = vld [vmem:[#allocation5 + $0x70] sm:$0xff]  ;;  %v57_v24 = vld [vmem:[#allocation5 + $0x78] sm:$0xff] }
  0x2c   :  { %v224_v22 = vpack.c.bf16 %v55_v21, %v54_v20  ;;  %v227_v25 = vpack.c.bf16 %v57_v24, %v56_v23  ;;  %v41_v26 = vld [vmem:[#allocation2] sm:$0xff]  ;;  %p288_p5 = por %p287_p4, %p286_p3 }
  0x2d   :  { %v152_v27 = vld [vmem:[%s385_s2] ss:$0 sm:$0xff] }
  0x2e   :  { %210 = vmatpush3.bf16.msra.mxu0 %v209_v7  ;;  %p289_p6 = pnand %p288_p5, %p282_p2 }
  0x2f   :  { %211 = vmatprep.subr.bf16.mxu0 %v313_v0 }
  0x32   :  { %213 = vmatpush3.bf16.msra.mxu0 %v212_v10 }
  0x33   :  { %214 = vmatprep.subr.bf16.mxu0 %v313_v0 }
  0x36   :  { %216 = vmatpush3.bf16.msra.mxu0 %v215_v13 }
  0x37   :  { %217 = vmatprep.subr.bf16.mxu0 %v313_v0 }
  0x3a   :  { %219 = vmatpush3.bf16.msra.mxu0 %v218_v16 }
  0x3b   :  { %220 = vmatprep.subr.bf16.mxu0 %v313_v0 }
  0x3e   :  { %222 = vmatpush3.bf16.msra.mxu0 %v221_v19 }
  0x3f   :  { %223 = vmatprep.subr.bf16.mxu0 %v313_v0 }
  0x42   :  { %225 = vmatpush3.bf16.msra.mxu0 %v224_v22 }
  0x43   :  { %226 = vmatprep.subr.bf16.mxu0 %v313_v0 }
  0x46   :  { %228 = vmatpush3.bf16.msra.mxu0 %v227_v25 }
  0x49   :  { %203 = vmatmul.mubr.f32.vlgmr.msra.gmra.mrb[0].mxu0 %v41_v26 }
 0x11c   :  { %v131_v28 = vpop.f32.mrb[0].mxu0 }
 0x11d   :  { %v132_v29 = vadd.f32 %v152_v27, %v131_v28  ;;  %v204_v30 = vpop.f32.mrb[1].mxu0 }
 0x11f   :  { %135 = vst [vmem:[#allocation7] sm:$0xff] %v132_v29 }
 0x120   :  { %292 = shalt.err (!%p289_p6)
}
 0x121   :  { %s293_s16 = scalar_lea.hbm %s386_s3, 128 }
 0x122   :  { %p294_p7 = scmp.ne.s32.totalorder %s386_s3, %s293_s16  ;;  %p297_p8 = scmp.lt.u32.totalorder %s293_s16, %s386_s3 }
 0x124   :  { %p299_p9 = pnand %p297_p8, %p294_p7 }
 0x126   :  { %302 = shalt.err (!%p299_p9)
}
 0x127   :  { %145 = dma.vmem_to_hbm [thread:$0]  %s143_s12, 128, %s386_s3, [#allocation4]  }
 0x128   :  { %307 = dma.done.wait [#allocation4], 128  }
 0x129   :  { %308 = vsyncadd [#allocation4], 4294967168 }
 0x12a   :  { %149 = vsyncpa [#allocation3], 1 }
 0x12b   :  { %150 = vsyncpa [#allocation6], 1 }
 0x12c   :  { %151 = vsyncpa [#allocation4], 1 }

</bundles_post_ra>
